<compile_context>
chip_gen: v5e
topology: v5e:2x2
jax: 0.10.0
libtpu: 0.0.40
codegen_flags: <defaults>
</compile_context>

<pallas_src>
import jax
import jax.numpy as jnp
from jax.experimental import pallas as pl
from jax.experimental.pallas import tpu as pltpu


def _round_up(x, m):
    return (x + m - 1) // m * m


# --------------------------------------------------------------------------- #
# Kernel body
# --------------------------------------------------------------------------- #
def ffn_kernel(x_ref, w1_ref, b1_ref, w2_ref, b2_ref, o_ref):
    # h1 = relu(x @ W1 + b1): bf16 MXU matmul with f32 accumulation.
    h1 = jnp.dot(x_ref[...], w1_ref[...], preferred_element_type=jnp.float32)
    h1 = jnp.maximum(h1 + b1_ref[...], 0.0)
    # h2 = relu(h1 @ W2 + b2): feed h1 back to the MXU in the compute dtype.
    # TODO(synk): for very large H1 (weights no longer VMEM-resident, esp. v7x
    # 64 MiB), chunk the hidden dim with an inner lax.fori_loop accumulating
    # into a (tm, H2p) f32 scratch, and add grid axes over H2 / H1 tiles.
    h2 = jnp.dot(h1.astype(w2_ref.dtype), w2_ref[...],
                 preferred_element_type=jnp.float32)
    h2 = jnp.maximum(h2 + b2_ref[...], 0.0)
    o_ref[...] = h2.astype(o_ref.dtype)


# --------------------------------------------------------------------------- #
# One-time parameter prep (hoisted out of the per-call path)
# --------------------------------------------------------------------------- #
def prepare_ffn_params(w1, b1, w2, b2, *, compute_dtype=jnp.bfloat16,
                       pad_lanes=None):
    """Pad + cast weights once. Call at model init, not per forward.

    w1: [D_in, H1]  (pre-transposed vs. torch's [H1, D_in]; computes x @ W1 + b1)
    b1: [H1]        w2: [H1, H2]        b2: [H2]
    """
    D_in, H1 = w1.shape
    H2 = w2.shape[1]
    if pad_lanes is None:
        # Lane-dense padding only pays once real feature dims reach a 128-lane
        # vreg; tiny MLPs use full-extent (unpadded) blocks instead.
        pad_lanes = max(D_in, H1, H2) >= 128
    if pad_lanes:
        Dp, H1p, H2p = (_round_up(d, 128) for d in (D_in, H1, H2))
    else:
        Dp, H1p, H2p = D_in, H1, H2

    cd = jnp.dtype(compute_dtype)
    # TODO(synk): on v7x, optionally store W1/W2 in fp8 (MXU-native) to halve
    # weight DMA bytes if model accuracy permits.

    def pad2(a, rows, cols):
        a = a.astype(cd)
        if a.shape == (rows, cols):
            return a
        return jnp.zeros((rows, cols), cd).at[:a.shape[0], :a.shape[1]].set(a)

    def pad_bias(b, cols, cols_p):
        b = b.reshape(1, cols).astype(jnp.float32)
        if cols_p == cols:
            return b
        return jnp.zeros((1, cols_p), jnp.float32).at[:, :cols].set(b)

    params = (pad2(w1, Dp, H1p), pad_bias(b1, H1, H1p),
              pad2(w2, H1p, H2p), pad_bias(b2, H2, H2p))
    meta = dict(D_in=D_in, H1=H1, H2=H2, Dp=Dp, H1p=H1p, H2p=H2p)
    return params, meta


# --------------------------------------------------------------------------- #
# Forward pass
# --------------------------------------------------------------------------- #
def _vmem_limit_bytes(tm, Dp, H1p, H2p, cd_bytes, out_bytes):
    # Resident single-buffered weights + f32 biases.
    weight_bytes = (Dp * H1p + H1p * H2p) * cd_bytes + (H1p + H2p) * 4
    # Double-buffered x row tile and output row tile.
    io_bytes = 2 * tm * (Dp * cd_bytes + H2p * out_bytes)
    # In-body intermediates: f32 h1 + its compute-dtype copy + f32 h2.
    body_bytes = tm * H1p * (4 + cd_bytes) + tm * H2p * 4
    need = weight_bytes + io_bytes + body_bytes + (2 << 20)
    try:
        cap = pltpu.get_tpu_info().vmem_capacity_bytes
    except Exception:
        cap = 64 << 20  # v7x per-TensorCore VMEM: safe lower bound everywhere
    return int(min(max(need, 16 << 20), cap))


def feed_forward(x, params, meta, *, tm=256, out_dtype=None):
    """x: [B, D_in]; params/meta from prepare_ffn_params()."""
    B, D_in = x.shape
    assert D_in == meta["D_in"], (D_in, meta["D_in"])
    w1p, b1p, w2p, b2p = params
    Dp, H1p, H2p, H2 = meta["Dp"], meta["H1p"], meta["H2p"], meta["H2"]
    cd = w1p.dtype
    out_dtype = x.dtype if out_dtype is None else out_dtype

    # Row tile: multiple of 16 (bf16 packs 16 sublanes/vreg). Split into >= 2
    # grid steps when the whole batch would otherwise be a single step so the
    # "parallel" row axis can shard across v7x's 2 TensorCores.
    full_rows = _round_up(B, 16)
    tm = min(tm, full_rows)
    if tm >= full_rows and full_rows > 16:
        tm = _round_up((full_rows + 1) // 2, 16)
    Bp = _round_up(B, tm)

    xp = x.astype(cd)
    if (Bp, Dp) != (B, D_in):
        xp = jnp.zeros((Bp, Dp), cd).at[:B, :D_in].set(xp)

    vmem_limit = _vmem_limit_bytes(tm, Dp, H1p, H2p,
                                   jnp.dtype(cd).itemsize,
                                   jnp.dtype(out_dtype).itemsize)

    def resident(shape):
        # Constant index_map -> no re-fetch across grid steps; one buffer only.
        return pl.BlockSpec(shape, lambda i: (0, 0), pipeline_mode=pl.Buffered(1))

    out_p = pl.pallas_call(
        ffn_kernel,
        out_shape=jax.ShapeDtypeStruct((Bp, H2p), out_dtype),
        grid_spec=pltpu.PrefetchScalarGridSpec(
            num_scalar_prefetch=0,
            grid=(Bp // tm,),
            in_specs=[
                pl.BlockSpec((tm, Dp), lambda i: (i, 0)),  # x row tile (pipelined)
                resident((Dp, H1p)),                       # W1 (fully resident)
                resident((1, H1p)),                        # b1
                resident((H1p, H2p)),                      # W2 (fully resident)
                resident((1, H2p)),                        # b2
            ],
            out_specs=pl.BlockSpec((tm, H2p), lambda i: (i, 0)),
        ),
        compiler_params=pltpu.CompilerParams(
            dimension_semantics=("parallel",),
            vmem_limit_bytes=vmem_limit,
        ),
    )(xp, w1p, b1p, w2p, b2p)

    if (Bp, H2p) != (B, H2):
        out_p = out_p[:B, :H2]
    return out_p


def reference(x, w1, b1, w2, b2):
    h1 = jnp.maximum(x @ w1 + b1.reshape(1, -1), 0.0)
    return jnp.maximum(h1 @ w2 + b2.reshape(1, -1), 0.0)


if __name__ == "__main__":
    key = jax.random.PRNGKey(0)

    def make_case(key, B, D_in, H1, H2):
        kx, kw1, kb1, kw2, kb2 = jax.random.split(key, 5)
        x = jax.random.normal(kx, (B, D_in), dtype=jnp.float32)
        w1 = jax.random.uniform(kw1, (D_in, H1), jnp.float32, -1.0, 1.0) / jnp.sqrt(D_in)
        b1 = jax.random.uniform(kb1, (H1,), jnp.float32, -1.0, 1.0) / jnp.sqrt(D_in)
        w2 = jax.random.uniform(kw2, (H1, H2), jnp.float32, -1.0, 1.0) / jnp.sqrt(H1)
        b2 = jax.random.uniform(kb2, (H2,), jnp.float32, -1.0, 1.0) / jnp.sqrt(H1)
        return x, w1, b1, w2, b2

    k1, k2 = jax.random.split(key)

    # Case 1: the shipped tiny cfg (input_dim=32, hidden_dim1=64, hidden_dim2=32,
    # batch=64) -> unpadded full-extent blocks, row grid split across 2 steps.
    x, w1, b1, w2, b2 = make_case(k1, B=64, D_in=32, H1=64, H2=32)
    params, meta = prepare_ffn_params(w1, b1, w2, b2)   # one-time prep
    out = jax.block_until_ready(feed_forward(x, params, meta))
    ref = reference(x, w1, b1, w2, b2)
    assert out.shape == ref.shape, (out.shape, ref.shape)
    # bf16 compute path -> loosened tolerance vs. the f32 reference.
    assert jnp.allclose(out, ref, atol=5e-2, rtol=5e-2), "case1 mismatch vs reference"

    # Case 2: larger dims exercising the lane-padded path + row/col un-padding.
    x2, w1_2, b1_2, w2_2, b2_2 = make_case(k2, B=50, D_in=160, H1=256, H2=192)
    params2, meta2 = prepare_ffn_params(w1_2, b1_2, w2_2, b2_2)
    out2 = jax.block_until_ready(feed_forward(x2, params2, meta2))
    ref2 = reference(x2, w1_2, b1_2, w2_2, b2_2)
    assert out2.shape == ref2.shape, (out2.shape, ref2.shape)
    assert jnp.allclose(out2, ref2, atol=5e-2, rtol=5e-2), "case2 mismatch vs reference"

    print("KERNEL_OK")
</pallas_src>

<mosaic_0001>
module attributes {stable_mosaic.version = 11 : i64} {
  func.func @ffn_kernel(%arg0: i32, %arg1: memref<32x32xbf16, #tpu.memory_space<vmem>>, %arg2: memref<32x64xbf16, #tpu.memory_space<vmem>>, %arg3: memref<1x64xf32, #tpu.memory_space<vmem>>, %arg4: memref<64x32xbf16, #tpu.memory_space<vmem>>, %arg5: memref<1x32xf32, #tpu.memory_space<vmem>>, %arg6: memref<32x32xf32, #tpu.memory_space<vmem>>) attributes {dimension_semantics = [#tpu.dimension_semantics<parallel>], iteration_bounds = array<i64: 2>, scalar_prefetch = 0 : i64, scratch_operands = 0 : i64, tpu.core_type = #tpu.core_type<tc>, window_params = [{transform_indices = @transform_0, window_bounds = array<i64: 32, 32>}, {pipeline_mode = #tpu.pipeline_mode<synchronous>, transform_indices = @transform_1, window_bounds = array<i64: 32, 64>}, {pipeline_mode = #tpu.pipeline_mode<synchronous>, transform_indices = @transform_2, window_bounds = array<i64: 1, 64>}, {pipeline_mode = #tpu.pipeline_mode<synchronous>, transform_indices = @transform_3, window_bounds = array<i64: 64, 32>}, {pipeline_mode = #tpu.pipeline_mode<synchronous>, transform_indices = @transform_4, window_bounds = array<i64: 1, 32>}, {transform_indices = @transform_5, window_bounds = array<i64: 32, 32>}]} {
    %c0 = arith.constant 0 : index
    %c0_0 = arith.constant 0 : index
    %0 = vector.load %arg1[%c0, %c0_0] : memref<32x32xbf16, #tpu.memory_space<vmem>>, vector<32x32xbf16>
    %c0_1 = arith.constant 0 : index
    %c0_2 = arith.constant 0 : index
    %1 = vector.load %arg2[%c0_1, %c0_2] : memref<32x64xbf16, #tpu.memory_space<vmem>>, vector<32x64xbf16>
    %cst = arith.constant dense<0.000000e+00> : vector<32x64xf32>
    %2 = tpu.matmul %0, %1, %cst {dimension_numbers = #tpu.dot_dimension_numbers<[1], [0], [0], [1], [0, 0, 1, 1], [], []>} : vector<32x32xbf16>, vector<32x64xbf16>, vector<32x64xf32> -> vector<32x64xf32>
    %c0_3 = arith.constant 0 : index
    %c0_4 = arith.constant 0 : index
    %3 = vector.load %arg3[%c0_3, %c0_4] : memref<1x64xf32, #tpu.memory_space<vmem>>, vector<1x64xf32>
    %4 = vector.broadcast %3 : vector<1x64xf32> to vector<32x64xf32>
    %5 = arith.addf %2, %4 : vector<32x64xf32>
    %cst_5 = arith.constant 0.000000e+00 : f32
    %6 = vector.broadcast %cst_5 : f32 to vector<32x64xf32>
    %7 = arith.maximumf %5, %6 : vector<32x64xf32>
    %8 = arith.truncf %7 : vector<32x64xf32> to vector<32x64xbf16>
    %c0_6 = arith.constant 0 : index
    %c0_7 = arith.constant 0 : index
    %9 = vector.load %arg4[%c0_6, %c0_7] : memref<64x32xbf16, #tpu.memory_space<vmem>>, vector<64x32xbf16>
    %cst_8 = arith.constant dense<0.000000e+00> : vector<32x32xf32>
    %10 = tpu.matmul %8, %9, %cst_8 {dimension_numbers = #tpu.dot_dimension_numbers<[1], [0], [0], [1], [0, 0, 1, 1], [], []>} : vector<32x64xbf16>, vector<64x32xbf16>, vector<32x32xf32> -> vector<32x32xf32>
    %c0_9 = arith.constant 0 : index
    %c0_10 = arith.constant 0 : index
    %11 = vector.load %arg5[%c0_9, %c0_10] : memref<1x32xf32, #tpu.memory_space<vmem>>, vector<1x32xf32>
    %12 = vector.broadcast %11 : vector<1x32xf32> to vector<32x32xf32>
    %13 = arith.addf %10, %12 : vector<32x32xf32>
    %cst_11 = arith.constant 0.000000e+00 : f32
    %14 = vector.broadcast %cst_11 : f32 to vector<32x32xf32>
    %15 = arith.maximumf %13, %14 : vector<32x32xf32>
    %c0_12 = arith.constant 0 : index
    %c0_13 = arith.constant 0 : index
    %16 = vector.load %arg6[%c0_12, %c0_13] : memref<32x32xf32, #tpu.memory_space<vmem>>, vector<32x32xf32>
    tpu.vector_store %arg6[%c0_12, %c0_13], %15 {strides = array<i32>} : memref<32x32xf32, #tpu.memory_space<vmem>>, vector<32x32xf32>,
    return
  }
  func.func @transform_0(%arg0: i32) -> (i32, i32) {
    %c0_i32 = arith.constant 0 : i32
    %c0_i32_0 = arith.constant 0 : i32
    return %arg0, %c0_i32 : i32, i32
  }
  func.func @transform_1(%arg0: i32) -> (i32, i32) {
    %c0_i32 = arith.constant 0 : i32
    %c0_i32_0 = arith.constant 0 : i32
    %c0_i32_1 = arith.constant 0 : i32
    return %c0_i32, %c0_i32_0 : i32, i32
  }
  func.func @transform_2(%arg0: i32) -> (i32, i32) {
    %c0_i32 = arith.constant 0 : i32
    %c0_i32_0 = arith.constant 0 : i32
    %c0_i32_1 = arith.constant 0 : i32
    return %c0_i32, %c0_i32_0 : i32, i32
  }
  func.func @transform_3(%arg0: i32) -> (i32, i32) {
    %c0_i32 = arith.constant 0 : i32
    %c0_i32_0 = arith.constant 0 : i32
    %c0_i32_1 = arith.constant 0 : i32
    return %c0_i32, %c0_i32_0 : i32, i32
  }
  func.func @transform_4(%arg0: i32) -> (i32, i32) {
    %c0_i32 = arith.constant 0 : i32
    %c0_i32_0 = arith.constant 0 : i32
    %c0_i32_1 = arith.constant 0 : i32
    return %c0_i32, %c0_i32_0 : i32, i32
  }
  func.func @transform_5(%arg0: i32) -> (i32, i32) {
    %c0_i32 = arith.constant 0 : i32
    %c0_i32_0 = arith.constant 0 : i32
    return %arg0, %c0_i32 : i32, i32
  }
}

</mosaic_0001>

<bundles_post_ra>
// kernel: tpu_custom_call.1
= control target key start
LH: loop header
LB: loop body
LE: loop exit
PB: predicated region body
PF: predicated region fallthrough
CT: control target
= control target key end

     0   :  { %s530_s18 = smov 0   ;;  %s581_s0 = inlined_call_operand.vmem [shape: bf16[64,32], index: 0, kind: input, shape index: {}]   ;;  %s582_s1 = inlined_call_operand.vmem [shape: bf16[32,64], index: 1, kind: input, shape index: {}]   ;;  %s583_s2 = inlined_call_operand.vmem [shape: f32[1,64], index: 2, kind: input, shape index: {}]   ;;  %s584_s3 = inlined_call_operand.vmem [shape: bf16[64,32], index: 3, kind: input, shape index: {}]   ;;  %s585_s4 = inlined_call_operand.vmem [shape: f32[1,32], index: 4, kind: input, shape index: {}]   ;;  %s586_s5 = inlined_call_operand.vmem [shape: f32[64,32], index: 5, kind: output, shape index: {}]  }
   0x1 LB: > { %s421_s19 = sadd.s32 4294967295, %s498_s18   ;;  %p425_p0 = scmp.ge.s32.totalorder %s498_s18, 1  ;;  %s498_s18 = sphi %s530_s18, %s15_s18  }
   0x2   : > { %p188_p1 = scmp.lt.s32.totalorder %s498_s18, 3 }
   0x4   : > { %p189_p2 = pnand %p425_p0, %p188_p1 }
   0x5   : > { %s426_s22 = sshll.u32 (!%p189_p2), %s421_s19, 2 }
   0x6   : > { %192 = sbr.rel (%p189_p2) target bundleno = 310 (0x136), region = 40  ;;  %p217_p3 = scmp.lt.s32.totalorder (!%p189_p2), %s426_s22, 7 }
   0xb   : > { %v471_v0 = vld [vmem:[%s582_s1 + $0x8] sm:$0xff]  ;;  %v470_v1 = vld [vmem:[%s582_s1] sm:$0xff]  ;;  %s588_s22 = smov (!%p217_p3, %s426_s22), 7  ;;  %vm263_vm0 = vcmask 261120   ;;  %v475_v4 = vld [vmem:[%s584_s3 + $0x18] sm:$0xff]  ;;  %vm331_vm1 = vcmask 523264  }
   0xc   : > { %276 = vmatpush.bf16.msra.mxu0 %v471_v0  ;;  %476 = vmatpush.bf16.msra.mxu3 %v471_v0  ;;  %s427_s25 = sshll.u32 %s588_s22, 2  ;;  %v474_v5 = vld [vmem:[%s584_s3 + $0x10] sm:$0xff]  ;;  %v473_v6 = vld [vmem:[%s584_s3 + $0x8] sm:$0xff]  ;;  %v472_v7 = vld [vmem:[%s584_s3] sm:$0xff]  ;;  %s429_s16 = sshll.u32 %s588_s22, 3 }
   0xd   : > { %s220_s28 = scalar_lea.vmem %s581_s0, %s427_s25  ;;  %342 = vmatpush.bf16.msra.mxu1 %v475_v4  ;;  %478 = vmatpush.bf16.msra.mxu2 %v475_v4  ;;  %v490_v9 = vld [vmem:[%s583_s2] ss:$0 sm:$0xff]  ;;  %s226_s20 = scalar_lea.vmem %s586_s5, %s429_s16 }
   0xe   : > { %v468_v2 = vld [vmem:[%s220_s28] sm:$0xff]  ;;  %v469_v3 = vld [vmem:[%s220_s28 + $0x8] sm:$0xff] }
   0xf   : > { %v491_v23 = vld [vmem:[%s585_s4] ss:$0 sm:$0xff] }
  0x10   : > { %277 = vmatpush.bf16.msra.mxu0 %v470_v1  ;;  %477 = vmatpush.bf16.msra.mxu3 %v470_v1 }
  0x11   : > { %343 = vmatpush.bf16.msra.mxu1 %v474_v5  ;;  %479 = vmatpush.bf16.msra.mxu2 %v474_v5 }
  0x13   : > { %446 = vmatmul.msk.bf16.vlgmr.msra.gmra.mxu0 %vm263_vm0, %v468_v2  ;;  %447 = vmatmul.msk.bf16.vlgmr.msra.gmra.mxu3 %vm263_vm0, %v469_v3 }
  0x15   : > { %344 = vmatpush.bf16.msra.mxu1 %v473_v6  ;;  %480 = vmatpush.bf16.msra.mxu2 %v473_v6 }
  0x19   : > { %345 = vmatpush.bf16.msra.mxu1 %v472_v7  ;;  %481 = vmatpush.bf16.msra.mxu2 %v472_v7 }
  0x90   : > { %v279_v8 = vpop.f32.mrf.mxu0 }
  0x91   : > { %v280_v10 = vadd.f32 %v490_v9, %v279_v8 }
  0x93   : > { %v289_v13 = vmax.f32 %v280_v10, 0.0 }
  0x96   : > { %v284_v11 = vpop.f32.mrf.mxu3 }
  0x97   : > { %v285_v16 = vadd.f32 %v490_v9, %v284_v11 }
  0x98   : > { %v281_v12 = vpop.f32.mrf.mxu0 }
  0x99   : > { %v282_v14 = vadd.f32 %v490_v9, %v281_v12  ;;  %v291_v20 = vmax.f32 %v285_v16, 0.0 }
  0x9b   : > { %v290_v15 = vmax.f32 %v282_v14, 0.0 }
  0x9d   : > { %v293_v17 = vpack.c.bf16 %v290_v15, %v289_v13 }
  0x9e   : > { %v286_v18 = vpop.f32.mrf.mxu3 }
  0x9f   : > { %v287_v19 = vadd.f32 %v490_v9, %v286_v18  ;;  %464 = vmatmul.msk.bf16.vlgmr.msra.gmra.mxu1 %vm331_vm1, %v293_v17 }
  0xa1   : > { %v292_v21 = vmax.f32 %v287_v19, 0.0 }
  0xa3   : > { %v294_v22 = vpack.c.bf16 %v292_v21, %v291_v20 }
  0xa5   : > { %465 = vmatmul.msk.bf16.vlgmr.msra.gmra.mxu2 %vm331_vm1, %v294_v22 }
 0x11c   : > { %v347_v24 = vpop.f32.mrf.mxu1 }
 0x11d   : > { %v348_v25 = vadd.f32 %v491_v23, %v347_v24 }
 0x11f   : > { %v357_v26 = vmax.f32 %v348_v25, 0.0 }
 0x121   : > { %361 = vst.msk [vmem:[%s226_s20] sm:$0xff] %vm263_vm0, %v357_v26 }
 0x124   : > { %v349_v27 = vpop.f32.mrf.mxu1 }
 0x125   : > { %v350_v28 = vadd.f32 %v491_v23, %v349_v27 }
 0x127   : > { %v358_v29 = vmax.f32 %v350_v28, 0.0 }
 0x128   : > { %v352_v30 = vpop.f32.mrf.mxu2 }
 0x129   : > { %362 = vst.msk [vmem:[%s226_s20 + $0x8] sm:$0xff] %vm263_vm0, %v358_v29  ;;  %v353_v31 = vadd.f32 %v491_v23, %v352_v30 }
 0x12b   : > { %v359_v32 = vmax.f32 %v353_v31, 0.0 }
 0x12d   : > { %363 = vst.msk [vmem:[%s226_s20 + $0x10] sm:$0xff] %vm263_vm0, %v359_v32 }
 0x130   : > { %v354_v33 = vpop.f32.mrf.mxu2 }
 0x131   : > { %v355_v34 = vadd.f32 %v491_v23, %v354_v33 }
 0x133   : > { %v360_v35 = vmax.f32 %v355_v34, 0.0 }
 0x135   : > { %364 = vst.msk [vmem:[%s226_s20 + $0x18] sm:$0xff] %vm263_vm0, %v360_v35 }
 0x136 PF: > { %s15_s18 = sadd.s32 1, %s498_s18  }
 0x137   : > { %p12_p4 = scmp.ge.s32.totalorder %s15_s18, 4  }
 0x139   :  { %14 = sbr.rel (!%p12_p4) target bundleno = 1 (0x1), region = 70 }

</bundles_post_ra>
